<compile_context>
chip_gen: v5e
topology: v5e:2x2
jax: 0.10.0
libtpu: 0.0.40
codegen_flags: <defaults>
</compile_context>

<pallas_src>
import jax
import jax.numpy as jnp
from jax import lax
from jax.experimental import pallas as pl
from jax.experimental.pallas import tpu as pltpu


def _round_up(n, m):
    return ((n + m - 1) // m) * m


def _nbytes(a):
    return a.size * a.dtype.itemsize


# -----------------------------------------------------------------------------
# One-time parameter preparation (run once per parameter update, NOT per call).
# -----------------------------------------------------------------------------
def prepare_params(params, weight_dtype=jnp.bfloat16):
    """Cast / pad / consolidate DQN weights for the Pallas kernel.

    params: dict with (in, out)-layout weights (PyTorch nn.Linear transposed):
      w1 (S, H1), b1 (1, H1), w2 (H1, H2), b2 (1, H2), w3 (H2, A), b3 (1, A).
    """
    w1, b1, w2, b2, w3, b3 = (params["w1"], params["b1"], params["w2"],
                              params["b2"], params["w3"], params["b3"])
    state_size, H1 = w1.shape
    H2 = w2.shape[1]
    A = w3.shape[1]
    assert H1 % 128 == 0 and H2 % 128 == 0, (
        "hidden sizes must be multiples of 128 (the DQNetwork uses 128/128)")

    Np = _round_up(A, 128)  # lane-dense fc3 output width (padded cols are zero)

    w1p = w1.astype(weight_dtype)                                    # (S,  H1)
    w2p = w2.astype(weight_dtype)                                    # (H1, H2)
    w3p = jnp.zeros((H2, Np), weight_dtype).at[:, :A].set(w3.astype(weight_dtype))

    bw = max(H1, H2, Np)
    bias = jnp.zeros((3, bw), jnp.float32)                           # one DMA, not 3
    bias = bias.at[0, :H1].set(b1.reshape(-1).astype(jnp.float32))
    bias = bias.at[1, :H2].set(b2.reshape(-1).astype(jnp.float32))
    bias = bias.at[2, :A].set(b3.reshape(-1).astype(jnp.float32))

    return dict(w1=w1p, w2=w2p, w3=w3p, bias=bias,
                state_size=state_size, action_size=A, padded_actions=Np)


# -----------------------------------------------------------------------------
# Kernels
# -----------------------------------------------------------------------------
def _dqn_mlp(x_ref, w1_ref, w2_ref, w3_ref, b_ref):
    """Shared body: returns f32 (BT, Np) padded Q-values."""
    # fc1 + ReLU  (bf16 cast done in-kernel; operands bf16, accumulation f32)
    x = x_ref[...].astype(w1_ref.dtype)
    h1 = jnp.dot(x, w1_ref[...], preferred_element_type=jnp.float32)
    h1 = jnp.maximum(h1 + b_ref[0:1, : w1_ref.shape[1]], 0.0)
    # fc2 + ReLU
    h2 = jnp.dot(h1.astype(w2_ref.dtype), w2_ref[...],
                 preferred_element_type=jnp.float32)
    h2 = jnp.maximum(h2 + b_ref[1:2, : w2_ref.shape[1]], 0.0)
    # fc3 (no activation) -- lane-dense padded output
    q = jnp.dot(h2.astype(w3_ref.dtype), w3_ref[...],
                preferred_element_type=jnp.float32)
    return q + b_ref[2:3, : w3_ref.shape[1]]


def dqn_q_kernel(x_ref, w1_ref, w2_ref, w3_ref, b_ref, out_ref):
    out_ref[...] = _dqn_mlp(x_ref, w1_ref, w2_ref, w3_ref, b_ref).astype(out_ref.dtype)


def make_act_kernel(action_size):
    """Fused forward + argmax (first occurrence, matching torch.argmax)."""
    def dqn_act_kernel(x_ref, w1_ref, w2_ref, w3_ref, b_ref, act_ref, qmax_ref):
        q = _dqn_mlp(x_ref, w1_ref, w2_ref, w3_ref, b_ref)            # (BT, Np) f32
        lane = lax.broadcasted_iota(jnp.int32, q.shape, 1)
        q = jnp.where(lane < action_size, q, -jnp.inf)                # mask pad lanes
        qmax = jnp.max(q, axis=-1, keepdims=True)
        first = jnp.where(q == qmax, lane, q.shape[-1])
        act_ref[...] = jnp.min(first, axis=-1, keepdims=True).astype(jnp.int32)
        qmax_ref[...] = qmax
    return dqn_act_kernel


# -----------------------------------------------------------------------------
# Wrappers
# -----------------------------------------------------------------------------
def _batch_layout(B, num_batch_tiles):
    BT = _round_up(pl.cdiv(B, num_batch_tiles), 8)   # batch tile, multiple of 8 sublanes
    Bp = _round_up(B, BT)
    return BT, Bp


def _pad_batch_rows(x, Bp):
    B = x.shape[0]
    if Bp == B:
        return x
    return jnp.zeros((Bp, x.shape[1]), x.dtype).at[:B].set(x)


def _in_specs(BT, S, H1, H2, Np, bw):
    return [
        pl.BlockSpec((BT, S), lambda i: (i, 0)),    # x: tiled over batch, narrow K (no pad)
        pl.BlockSpec((S, H1), lambda i: (0, 0)),    # w1: VMEM-resident
        pl.BlockSpec((H1, H2), lambda i: (0, 0)),   # w2: VMEM-resident
        pl.BlockSpec((H2, Np), lambda i: (0, 0)),   # w3: VMEM-resident
        pl.BlockSpec((3, bw), lambda i: (0, 0)),    # consolidated biases: one block
    ]


def dqn_forward(x, prepared, *, num_batch_tiles=1, out_dtype=jnp.float32):
    """Q-values, shape (B, action_size).

    num_batch_tiles: 1 for v5e/v6e (single TensorCore per chip); use 2 on v7x
    for large training batches so the "parallel" batch axis engages both TCs.
    """
    w1, w2, w3, bias = prepared["w1"], prepared["w2"], prepared["w3"], prepared["bias"]
    S, A, Np = prepared["state_size"], prepared["action_size"], prepared["padded_actions"]
    H1, H2 = w1.shape[1], w2.shape[1]
    bw = bias.shape[1]
    B = x.shape[0]

    BT, Bp = _batch_layout(B, num_batch_tiles)
    xp = _pad_batch_rows(x, Bp)

    cost = pl.CostEstimate(
        flops=2 * Bp * (S * H1 + H1 * H2 + H2 * Np),
        transcendentals=0,
        bytes_accessed=(_nbytes(xp) + _nbytes(w1) + _nbytes(w2) + _nbytes(w3)
                        + _nbytes(bias) + Bp * Np * jnp.dtype(out_dtype).itemsize),
    )

    out = pl.pallas_call(
        dqn_q_kernel,
        out_shape=jax.ShapeDtypeStruct((Bp, Np), out_dtype),
        grid=(Bp // BT,),
        in_specs=_in_specs(BT, S, H1, H2, Np, bw),
        out_specs=pl.BlockSpec((BT, Np), lambda i: (i, 0)),
        compiler_params=pltpu.CompilerParams(
            dimension_semantics=("parallel",)),      # shard batch across TCs (v7x)
        cost_estimate=cost,
    )(xp, w1, w2, w3, bias)

    # Padded batch rows / padded action lanes are sliced away here (invariant).
    return out[:B, :A]


def dqn_select_action(x, prepared, *, num_batch_tiles=1):
    """Fused forward + argmax: returns (actions int32 (B,), max_q f32 (B,))."""
    w1, w2, w3, bias = prepared["w1"], prepared["w2"], prepared["w3"], prepared["bias"]
    S, A, Np = prepared["state_size"], prepared["action_size"], prepared["padded_actions"]
    H1, H2 = w1.shape[1], w2.shape[1]
    bw = bias.shape[1]
    B = x.shape[0]

    BT, Bp = _batch_layout(B, num_batch_tiles)
    xp = _pad_batch_rows(x, Bp)

    cost = pl.CostEstimate(
        flops=2 * Bp * (S * H1 + H1 * H2 + H2 * Np),
        transcendentals=0,
        bytes_accessed=(_nbytes(xp) + _nbytes(w1) + _nbytes(w2) + _nbytes(w3)
                        + _nbytes(bias) + Bp * 8),
    )

    actions, max_q = pl.pallas_call(
        make_act_kernel(A),
        out_shape=(jax.ShapeDtypeStruct((Bp, 1), jnp.int32),
                   jax.ShapeDtypeStruct((Bp, 1), jnp.float32)),
        grid=(Bp // BT,),
        in_specs=_in_specs(BT, S, H1, H2, Np, bw),
        out_specs=(pl.BlockSpec((BT, 1), lambda i: (i, 0)),
                   pl.BlockSpec((BT, 1), lambda i: (i, 0))),
        compiler_params=pltpu.CompilerParams(
            dimension_semantics=("parallel",)),
        cost_estimate=cost,
    )(xp, w1, w2, w3, bias)

    return actions[:B, 0], max_q[:B, 0]


# -----------------------------------------------------------------------------
# Init + references (mirror the PyTorch module)
# -----------------------------------------------------------------------------
def init_params(key, state_size, action_size, fc1_units=128, fc2_units=128):
    """weights ~ U(-1/sqrt(fan_in), 1/sqrt(fan_in)), biases = 0; (in, out) layout."""
    k1, k2, k3 = jax.random.split(key, 3)

    def layer(k, fan_in, fan_out):
        bound = 1.0 / jnp.sqrt(jnp.float32(fan_in))
        w = jax.random.uniform(k, (fan_in, fan_out), jnp.float32, -bound, bound)
        b = jnp.zeros((1, fan_out), jnp.float32)
        return w, b

    w1, b1 = layer(k1, state_size, fc1_units)
    w2, b2 = layer(k2, fc1_units, fc2_units)
    w3, b3 = layer(k3, fc2_units, action_size)
    return dict(w1=w1, b1=b1, w2=w2, b2=b2, w3=w3, b3=b3)


def dqn_reference_bf16(x, p):
    """Mirrors the kernel math: bf16 dot operands, f32 accumulation, f32 epilogue."""
    bf = jnp.bfloat16
    h1 = jnp.dot(x.astype(bf), p["w1"].astype(bf),
                 preferred_element_type=jnp.float32) + p["b1"]
    h1 = jnp.maximum(h1, 0.0)
    h2 = jnp.dot(h1.astype(bf), p["w2"].astype(bf),
                 preferred_element_type=jnp.float32) + p["b2"]
    h2 = jnp.maximum(h2, 0.0)
    return jnp.dot(h2.astype(bf), p["w3"].astype(bf),
                   preferred_element_type=jnp.float32) + p["b3"]


def dqn_reference_f32(x, p):
    h1 = jnp.maximum(x @ p["w1"] + p["b1"], 0.0)
    h2 = jnp.maximum(h1 @ p["w2"] + p["b2"], 0.0)
    return h2 @ p["w3"] + p["b3"]


if __name__ == "__main__":
    # Small shapes consistent with the DQN forward: batch=8, state_size=16, action_size=4
    batch, state_size, action_size = 8, 16, 4

    key = jax.random.PRNGKey(0)
    kx, kp = jax.random.split(key)
    x = jax.random.normal(kx, (batch, state_size), jnp.float32)
    params = init_params(kp, state_size, action_size)

    prepared = prepare_params(params)            # one-time prep (per parameter update)

    # Q-value forward.
    q = jax.block_until_ready(dqn_forward(x, prepared))
    assert q.shape == (batch, action_size)

    # Exact-math check vs a reference mirroring the kernel's bf16/f32 scheme.
    ref_bf16 = dqn_reference_bf16(x, params)
    assert jnp.allclose(q, ref_bf16, atol=1e-3, rtol=1e-3), "mismatch vs bf16 reference"
    # Loose check vs pure-f32 module semantics (bf16 quantization error only).
    ref_f32 = dqn_reference_f32(x, params)
    assert jnp.allclose(q, ref_f32, atol=5e-2, rtol=5e-2), "mismatch vs f32 reference"

    # Fused action-selection path.
    actions, max_q = dqn_select_action(x, prepared)
    actions, max_q = jax.block_until_ready((actions, max_q))
    assert actions.shape == (batch,) and actions.dtype == jnp.int32
    assert jnp.array_equal(actions, jnp.argmax(q, axis=-1).astype(jnp.int32)), \
        "fused argmax mismatch"
    assert jnp.allclose(max_q, jnp.max(q, axis=-1), atol=1e-5, rtol=1e-5), \
        "fused max-Q mismatch"

    print("KERNEL_OK")
</pallas_src>

<mosaic_0001>
module attributes {stable_mosaic.version = 11 : i64} {
  func.func @dqn_q_kernel(%arg0: i32, %arg1: memref<8x16xf32, #tpu.memory_space<vmem>>, %arg2: memref<16x128xbf16, #tpu.memory_space<vmem>>, %arg3: memref<128x128xbf16, #tpu.memory_space<vmem>>, %arg4: memref<128x128xbf16, #tpu.memory_space<vmem>>, %arg5: memref<3x128xf32, #tpu.memory_space<vmem>>, %arg6: memref<8x128xf32, #tpu.memory_space<vmem>>) attributes {dimension_semantics = [#tpu.dimension_semantics<parallel>], iteration_bounds = array<i64: 1>, scalar_prefetch = 0 : i64, scratch_operands = 0 : i64, tpu.core_type = #tpu.core_type<tc>, window_params = [{transform_indices = @transform_0, window_bounds = array<i64: 8, 16>}, {pipeline_mode = #tpu.pipeline_mode<synchronous>, transform_indices = @transform_1, window_bounds = array<i64: 16, 128>}, {pipeline_mode = #tpu.pipeline_mode<synchronous>, transform_indices = @transform_2, window_bounds = array<i64: 128, 128>}, {pipeline_mode = #tpu.pipeline_mode<synchronous>, transform_indices = @transform_3, window_bounds = array<i64: 128, 128>}, {pipeline_mode = #tpu.pipeline_mode<synchronous>, transform_indices = @transform_4, window_bounds = array<i64: 3, 128>}, {transform_indices = @transform_5, window_bounds = array<i64: 8, 128>}]} {
    %c0 = arith.constant 0 : index
    %c0_0 = arith.constant 0 : index
    %0 = vector.load %arg1[%c0, %c0_0] : memref<8x16xf32, #tpu.memory_space<vmem>>, vector<8x16xf32>
    %1 = arith.truncf %0 : vector<8x16xf32> to vector<8x16xbf16>
    %c0_1 = arith.constant 0 : index
    %c0_2 = arith.constant 0 : index
    %2 = vector.load %arg2[%c0_1, %c0_2] : memref<16x128xbf16, #tpu.memory_space<vmem>>, vector<16x128xbf16>
    %cst = arith.constant dense<0.000000e+00> : vector<8x128xf32>
    %3 = tpu.matmul %1, %2, %cst {dimension_numbers = #tpu.dot_dimension_numbers<[1], [0], [0], [1], [0, 0, 1, 1], [], []>} : vector<8x16xbf16>, vector<16x128xbf16>, vector<8x128xf32> -> vector<8x128xf32>
    %c0_3 = arith.constant 0 : index
    %c0_4 = arith.constant 0 : index
    %4 = vector.load %arg5[%c0_3, %c0_4] : memref<3x128xf32, #tpu.memory_space<vmem>>, vector<1x128xf32>
    %5 = vector.broadcast %4 : vector<1x128xf32> to vector<8x128xf32>
    %6 = arith.addf %3, %5 : vector<8x128xf32>
    %cst_5 = arith.constant 0.000000e+00 : f32
    %7 = vector.broadcast %cst_5 : f32 to vector<8x128xf32>
    %8 = arith.maximumf %6, %7 : vector<8x128xf32>
    %9 = arith.truncf %8 : vector<8x128xf32> to vector<8x128xbf16>
    %c0_6 = arith.constant 0 : index
    %c0_7 = arith.constant 0 : index
    %10 = vector.load %arg3[%c0_6, %c0_7] : memref<128x128xbf16, #tpu.memory_space<vmem>>, vector<128x128xbf16>
    %cst_8 = arith.constant dense<0.000000e+00> : vector<8x128xf32>
    %11 = tpu.matmul %9, %10, %cst_8 {dimension_numbers = #tpu.dot_dimension_numbers<[1], [0], [0], [1], [0, 0, 1, 1], [], []>} : vector<8x128xbf16>, vector<128x128xbf16>, vector<8x128xf32> -> vector<8x128xf32>
    %c1 = arith.constant 1 : index
    %c0_9 = arith.constant 0 : index
    %12 = vector.load %arg5[%c1, %c0_9] : memref<3x128xf32, #tpu.memory_space<vmem>>, vector<1x128xf32>
    %13 = vector.broadcast %12 : vector<1x128xf32> to vector<8x128xf32>
    %14 = arith.addf %11, %13 : vector<8x128xf32>
    %cst_10 = arith.constant 0.000000e+00 : f32
    %15 = vector.broadcast %cst_10 : f32 to vector<8x128xf32>
    %16 = arith.maximumf %14, %15 : vector<8x128xf32>
    %17 = arith.truncf %16 : vector<8x128xf32> to vector<8x128xbf16>
    %c0_11 = arith.constant 0 : index
    %c0_12 = arith.constant 0 : index
    %18 = vector.load %arg4[%c0_11, %c0_12] : memref<128x128xbf16, #tpu.memory_space<vmem>>, vector<128x128xbf16>
    %cst_13 = arith.constant dense<0.000000e+00> : vector<8x128xf32>
    %19 = tpu.matmul %17, %18, %cst_13 {dimension_numbers = #tpu.dot_dimension_numbers<[1], [0], [0], [1], [0, 0, 1, 1], [], []>} : vector<8x128xbf16>, vector<128x128xbf16>, vector<8x128xf32> -> vector<8x128xf32>
    %c2 = arith.constant 2 : index
    %c0_14 = arith.constant 0 : index
    %20 = vector.load %arg5[%c2, %c0_14] : memref<3x128xf32, #tpu.memory_space<vmem>>, vector<1x128xf32>
    %21 = vector.broadcast %20 : vector<1x128xf32> to vector<8x128xf32>
    %22 = arith.addf %19, %21 : vector<8x128xf32>
    %c0_15 = arith.constant 0 : index
    %c0_16 = arith.constant 0 : index
    %23 = vector.load %arg6[%c0_15, %c0_16] : memref<8x128xf32, #tpu.memory_space<vmem>>, vector<8x128xf32>
    tpu.vector_store %arg6[%c0_15, %c0_16], %22 {strides = array<i32>} : memref<8x128xf32, #tpu.memory_space<vmem>>, vector<8x128xf32>,
    return
  }
  func.func @transform_0(%arg0: i32) -> (i32, i32) {
    %c0_i32 = arith.constant 0 : i32
    %c0_i32_0 = arith.constant 0 : i32
    return %arg0, %c0_i32 : i32, i32
  }
  func.func @transform_1(%arg0: i32) -> (i32, i32) {
    %c0_i32 = arith.constant 0 : i32
    %c0_i32_0 = arith.constant 0 : i32
    %c0_i32_1 = arith.constant 0 : i32
    return %c0_i32, %c0_i32_0 : i32, i32
  }
  func.func @transform_2(%arg0: i32) -> (i32, i32) {
    %c0_i32 = arith.constant 0 : i32
    %c0_i32_0 = arith.constant 0 : i32
    %c0_i32_1 = arith.constant 0 : i32
    return %c0_i32, %c0_i32_0 : i32, i32
  }
  func.func @transform_3(%arg0: i32) -> (i32, i32) {
    %c0_i32 = arith.constant 0 : i32
    %c0_i32_0 = arith.constant 0 : i32
    %c0_i32_1 = arith.constant 0 : i32
    return %c0_i32, %c0_i32_0 : i32, i32
  }
  func.func @transform_4(%arg0: i32) -> (i32, i32) {
    %c0_i32 = arith.constant 0 : i32
    %c0_i32_0 = arith.constant 0 : i32
    %c0_i32_1 = arith.constant 0 : i32
    return %c0_i32, %c0_i32_0 : i32, i32
  }
  func.func @transform_5(%arg0: i32) -> (i32, i32) {
    %c0_i32 = arith.constant 0 : i32
    %c0_i32_0 = arith.constant 0 : i32
    return %arg0, %c0_i32 : i32, i32
  }
}

</mosaic_0001>

<bundles_post_ra>
// kernel: tpu_custom_call.1
= control target key start
LH: loop header
LB: loop body
LE: loop exit
PB: predicated region body
PF: predicated region fallthrough
CT: control target
= control target key end

     0   :  { %10 = vsyncpa [#allocation3], 0  ;;  %s612_s0 = inlined_call_operand.hbm [shape: f32[8,16], index: 0, kind: input, shape index: {}]   ;;  %s613_s1 = inlined_call_operand.hbm [shape: bf16[16,128], index: 1, kind: input, shape index: {}]   ;;  %s614_s2 = inlined_call_operand.hbm [shape: bf16[128,128], index: 2, kind: input, shape index: {}]   ;;  %s615_s3 = inlined_call_operand.hbm [shape: bf16[128,128], index: 3, kind: input, shape index: {}]   ;;  %s616_s4 = inlined_call_operand.hbm [shape: f32[3,128], index: 4, kind: input, shape index: {}]   ;;  %s617_s5 = inlined_call_operand.hbm [shape: f32[8,128], index: 5, kind: output, shape index: {}]  }
   0x1   :  { %11 = vsyncpa [#allocation6], 0 }
   0x2   :  { %12 = vsyncpa [#allocation9], 0  ;;  %s29_s20 = sshll.u32 %s613_s1, 4  ;;  %s30_s20 = int_to_ptr.hbm [resolvable:$true] %s29_s20 }
   0x3   :  { %13 = vsyncpa [#allocation4], 0  ;;  %s556_s21 = smov [#allocation5]   ;;  %s55_s25 = sshll.u32 %s615_s3, 4  ;;  %s56_s25 = int_to_ptr.hbm [resolvable:$true] %s55_s25 }
   0x4   :  { %s31_s22 = sshll.u32 %s556_s21, 4  ;;  %s557_s26 = smov 64   ;;  %s32_s22 = int_to_ptr.vmem [resolvable:$true] %s31_s22 }
   0x5   :  { %s558_s27 = smov 4   ;;  %s559_s28 = smov [#allocation8]  }
   0x6   :  { %37 = dma.hbm_to_vmem [thread:$0]  %s30_s20, 128, %s32_s22, [#allocation6], %s557_s26, %s557_s26, %s558_s27  }
   0x7   :  { %s57_s29 = sshll.u32 %s559_s28, 4  ;;  %s19_s7 = sshll.u32 %s612_s0, 4  ;;  %s58_s29 = int_to_ptr.vmem [resolvable:$true] %s57_s29  ;;  %s20_s7 = int_to_ptr.hbm [resolvable:$true] %s19_s7 }
   0x8   :  { %63 = dma.hbm_to_vmem [thread:$0]  %s56_s25, 1024, %s58_s29, [#allocation9], %s557_s26, %s557_s26, %s558_s27  }
   0x9   :  { %s42_s9 = sshll.u32 %s614_s2, 4  ;;  %s560_s10 = smov [#allocation2]   ;;  %s43_s9 = int_to_ptr.hbm [resolvable:$true] %s42_s9 }
   0xa   :  { %s21_s11 = sshll.u32 %s560_s10, 4  ;;  %s561_s3 = smov [#allocation7]   ;;  %s22_s11 = int_to_ptr.vmem [resolvable:$true] %s21_s11 }
   0xb   :  { %24 = dma.hbm_to_vmem [thread:$0]  %s20_s7, 128, %s22_s11, [#allocation3]  }
   0xc   :  { %s44_s12 = sshll.u32 %s561_s3, 4  ;;  %s69_s15 = sshll.u32 %s616_s4, 4  ;;  %s45_s12 = int_to_ptr.vmem [resolvable:$true] %s44_s12  ;;  %s70_s15 = int_to_ptr.hbm [resolvable:$true] %s69_s15 }
   0xd   :  { %50 = dma.hbm_to_vmem [thread:$0]  %s43_s9, 1024, %s45_s12, [#allocation6], %s557_s26, %s557_s26, %s558_s27  }
   0xe   :  { %s562_s0 = smov [#allocation10]  }
   0xf   :  { %s71_s16 = sshll.u32 %s562_s0, 4  ;;  %s72_s16 = int_to_ptr.vmem [resolvable:$true] %s71_s16 }
  0x10   :  { %74 = dma.hbm_to_vmem [thread:$0]  %s70_s15, 64, %s72_s16, [#allocation9]  }
  0x11   :  { %548 = dma.done.wait [#allocation3], 128  }
  0x12   :  { %549 = vsyncadd [#allocation3], 4294967168 }
  0x13   :  { %550 = dma.done.wait [#allocation6], 1152  }
  0x14   :  { %551 = vsyncadd [#allocation6], 4294966144 }
  0x15   :  { %552 = dma.done.wait [#allocation9], 1088  }
  0x16   :  { %553 = vsyncadd [#allocation9], 4294966208  ;;  %v376_v0 = vld [vmem:[#allocation5] sm:$0xff]  ;;  %v96_v1 = vld [vmem:[#allocation2] sm:$0xff]  ;;  %vm108_vm0 = vcmask 130048   ;;  %s563_s2 = smov [#allocation11]  }
  0x17   :  { %v384_v2 = vld [vmem:[#allocation7 + $0x38] sm:$0xff]  ;;  %v97_v3 = vpack.c.bf16 %v96_v1, %v96_v1  ;;  %119 = vmatpush.bf16.msra.mxu0 %v376_v0  ;;  %v383_v4 = vld [vmem:[#allocation7 + $0x30] sm:$0xff]  ;;  %v382_v5 = vld [vmem:[#allocation7 + $0x28] sm:$0xff]  ;;  %s293_s4 = sshll.u32 %s563_s2, 4  ;;  %s295_s19 = sshll.u32 %s617_s5, 4  ;;  %s294_s4 = int_to_ptr.vmem [resolvable:$true] %s293_s4  ;;  %s296_s19 = int_to_ptr.hbm [resolvable:$true] %s295_s19 }
  0x18   :  { %193 = vmatpush.bf16.msra.mxu1 %v384_v2  ;;  %v381_v6 = vld [vmem:[#allocation7 + $0x20] sm:$0xff]  ;;  %v380_v7 = vld [vmem:[#allocation7 + $0x18] sm:$0xff]  ;;  %v379_v8 = vld [vmem:[#allocation7 + $0x10] sm:$0xff] }
  0x19   :  { %v378_v9 = vld [vmem:[#allocation7 + $0x8] sm:$0xff]  ;;  %v377_v10 = vld [vmem:[#allocation7] sm:$0xff]  ;;  %v392_v11 = vld [vmem:[#allocation8 + $0x38] sm:$0xff] }
  0x1a   :  { %311 = vmatmul.msk.bf16.vlgmr.msra.gmra.mxu0 %vm108_vm0, %v97_v3  ;;  %274 = vmatpush.bf16.msra.mxu2 %v392_v11  ;;  %v391_v12 = vld [vmem:[#allocation8 + $0x30] sm:$0xff]  ;;  %v390_v13 = vld [vmem:[#allocation8 + $0x28] sm:$0xff]  ;;  %v389_v14 = vld [vmem:[#allocation8 + $0x20] sm:$0xff] }
  0x1b   :  { %v388_v15 = vld [vmem:[#allocation8 + $0x18] sm:$0xff]  ;;  %v387_v16 = vld [vmem:[#allocation8 + $0x10] sm:$0xff]  ;;  %v401_v17 = vld [vmem:[#allocation10] ss:$0 sm:$0xff] }
  0x1c   :  { %194 = vmatpush.bf16.msra.mxu1 %v383_v4  ;;  %v386_v23 = vld [vmem:[#allocation8 + $0x8] sm:$0xff]  ;;  %v385_v24 = vld [vmem:[#allocation8] sm:$0xff] }
  0x1d   :  { %v402_v25 = vld [vmem:[#allocation10 + $0x1] ss:$0 sm:$0xff]  ;;  %v403_v31 = vld [vmem:[#allocation10 + $0x2] ss:$0 sm:$0xff] }
  0x1e   :  { %275 = vmatpush.bf16.msra.mxu2 %v391_v12 }
  0x20   :  { %195 = vmatpush.bf16.msra.mxu1 %v382_v5 }
  0x22   :  { %276 = vmatpush.bf16.msra.mxu2 %v390_v13 }
  0x24   :  { %196 = vmatpush.bf16.msra.mxu1 %v381_v6 }
  0x26   :  { %277 = vmatpush.bf16.msra.mxu2 %v389_v14 }
  0x28   :  { %197 = vmatpush.bf16.msra.mxu1 %v380_v7 }
  0x2a   :  { %278 = vmatpush.bf16.msra.mxu2 %v388_v15 }
  0x2c   :  { %198 = vmatpush.bf16.msra.mxu1 %v379_v8 }
  0x2e   :  { %279 = vmatpush.bf16.msra.mxu2 %v387_v16 }
  0x30   :  { %199 = vmatpush.bf16.msra.mxu1 %v378_v9 }
  0x32   :  { %280 = vmatpush.bf16.msra.mxu2 %v386_v23 }
  0x34   :  { %200 = vmatpush.bf16.msra.mxu1 %v377_v10 }
  0x36   :  { %281 = vmatpush.bf16.msra.mxu2 %v385_v24 }
  0x97   :  { %v121_v18 = vpop.f32.mrf.mxu0 }
  0x98   :  { %v122_v19 = vadd.f32 %v401_v17, %v121_v18 }
  0x9a   :  { %v125_v20 = vmax.f32 %v122_v19, 0.0 }
  0x9c   :  { %v126_v21 = vpack.c.bf16 %v125_v20, %v125_v20 }
  0x9e   :  { %201 = vmatmul.bf16.vlgmr.msra.gmra.mxu1 %v126_v21 }
  0x9f   :  { %v123_v22 = vpop.f32.mrf.mxu0 }
 0x11b   :  { %v202_v26 = vpop.f32.mrf.mxu1 }
 0x11c   :  { %v203_v27 = vadd.f32 %v402_v25, %v202_v26 }
 0x11e   :  { %v206_v28 = vmax.f32 %v203_v27, 0.0 }
 0x120   :  { %v207_v29 = vpack.c.bf16 %v206_v28, %v206_v28 }
 0x122   :  { %282 = vmatmul.bf16.vlgmr.msra.gmra.mxu2 %v207_v29 }
 0x123   :  { %v204_v30 = vpop.f32.mrf.mxu1 }
 0x1a5   :  { %v283_v32 = vpop.f32.mrf.mxu2 }
 0x1a6   :  { %v284_v33 = vadd.f32 %v403_v31, %v283_v32 }
 0x1a8   :  { %287 = vst [vmem:[#allocation11] sm:$0xff] %v284_v33 }
 0x1a9   :  { %298 = dma.vmem_to_hbm [thread:$0]  %s294_s4, 128, %s296_s19, [#allocation4]  }
 0x1ad   :  { %v285_v34 = vpop.f32.mrf.mxu2 }
 0x1ae   :  { %554 = dma.done.wait [#allocation4], 128  }
 0x1af   :  { %555 = vsyncadd [#allocation4], 4294967168 }
 0x1b0   :  { %303 = vsyncpa [#allocation3], 1 }
 0x1b1   :  { %304 = vsyncpa [#allocation6], 1 }
 0x1b2   :  { %305 = vsyncpa [#allocation9], 1 }
 0x1b3   :  { %306 = vsyncpa [#allocation4], 1 }

</bundles_post_ra>
